<compile_context>
chip_gen: v5e
topology: v5e:2x2
jax: 0.10.0
libtpu: 0.0.40
codegen_flags: <defaults>
</compile_context>

<pallas_src>
import jax
import jax.numpy as jnp
from jax.experimental import pallas as pl
from jax.experimental.pallas import tpu as pltpu

_MiB = 1024 * 1024


def deriv1rbf_kernel(inv_l2_ref, neg_c2_ref, x1_ref, x2t_ref, out_ref):
    # inv_l2_ref : SMEM (1, d)              -- 1 / l_a^2
    # neg_c2_ref : SMEM (1, 1)              -- -c^2
    # x1_ref     : VMEM (tile_i, d)         -- tile of X1 rows
    # x2t_ref    : VMEM (d, n2_pad)         -- X2 transposed, lane-padded (resident)
    # out_ref    : VMEM (tile_i, d*n2_pad)  -- K[i, a, j] flattened as lanes a*n2_pad + j
    tile_i, d = x1_ref.shape
    n2 = x2t_ref.shape[1]

    neg_c2 = neg_c2_ref[0, 0]

    # Pass 1: store dl = D / l_a^2 straight into the output slab, accumulate r2.
    r2 = jnp.zeros((tile_i, n2), dtype=jnp.float32)
    for a in range(d):  # static unroll; d (n_features) is small
        diff = x1_ref[:, a:a + 1] - x2t_ref[a:a + 1, :]   # (tile_i, n2)
        dl = diff * inv_l2_ref[0, a]                      # D / l_a^2
        out_ref[:, a * n2:(a + 1) * n2] = dl
        r2 = r2 + dl * diff                               # (D / l_a)^2, accumulated over a

    fr = neg_c2 * jnp.exp(-0.5 * r2)                      # -c^2 * exp(-0.5 r^2)

    # Pass 2: rescale each slab in place (extra vld instead of an extra live buffer).
    for a in range(d):
        sl = slice(a * n2, (a + 1) * n2)
        out_ref[:, sl] = out_ref[:, sl] * fr


def _round_up(x, m):
    return ((x + m - 1) // m) * m


def _vmem_caps():
    """(usable budget, vmem_limit, physical cap) in bytes, generation-aware."""
    try:
        cap = int(pltpu.get_tpu_info().vmem_capacity_bytes)
    except Exception:
        cap = 64 * _MiB  # conservative fallback (v7x-sized)
    # v7x (64 MiB)  -> budget 40 MiB, limit 48 MiB
    # v5e/v6e (128) -> budget 96 MiB, limit 104 MiB
    budget = max(16 * _MiB, min(int(cap * 0.75), cap - 24 * _MiB))
    limit = max(budget, min(budget + 8 * _MiB, cap - 16 * _MiB))
    return budget, limit


def _choose_tile_rows(n1, d, n2_pad, budget, cap_rows=1024):
    """Row-tile size: multiple of 8, sized against real per-step VMEM usage."""
    # Per grid step:
    #   output block   : tile_i * d * n2_pad * 4   (x2, double-buffered)
    #   X1 block       : tile_i * d * 4            (x2)
    #   temporaries    : diff / r2 / fr / slab read ~ 4 * tile_i * n2_pad * 4
    #   X2^T block     : d * n2_pad * 4            (x2, fixed)
    per_row = 4 * (2 * d * n2_pad + 2 * d + 4 * n2_pad)
    fixed = 2 * 4 * d * n2_pad
    avail = budget - fixed
    if avail < 8 * per_row:
        # TODO(synk): tile over n2 as well for extreme n2 instead of refusing.
        raise ValueError(
            f"Deriv1RBF Pallas kernel: n2={n2_pad} too large for the VMEM budget "
            f"({budget} bytes); n2-axis tiling not implemented."
        )
    t = min(((avail // per_row) // 8) * 8, cap_rows)

    n1_8 = _round_up(n1, 8)
    t = min(t, n1_8)
    # Prefer >=2 grid steps so both v7x TensorCores get work (cheap on 1-TC chips).
    if t >= n1_8 and n1_8 >= 16:
        t = max(8, ((n1_8 // 2) // 8) * 8)
    return max(t, 8)


def deriv1rbf(X1, X2, overall_scaling, character_length, *, max_tile_rows=1024):
    """Pallas forward of Deriv1RBF. Returns (n1, d, n2) float32."""
    X1 = jnp.asarray(X1, jnp.float32)
    if X2 is None:
        X2 = X1
    X2 = jnp.asarray(X2, jnp.float32)
    n1, d = X1.shape
    n2 = X2.shape[0]

    # Module stores log-params; c = exp(_c) == overall_scaling, l = exp(_l) == character_length.
    c = jnp.reshape(overall_scaling, ()).astype(jnp.float32)
    l = jnp.reshape(character_length, (d,)).astype(jnp.float32)

    inv_l2 = (1.0 / (l * l)).reshape(1, d)     # SMEM scalars
    neg_c2 = (-(c * c)).reshape(1, 1)          # minus sign of the forward folded in here

    budget, vmem_limit = _vmem_caps()

    # Lane-align n2 (every per-feature slab store starts on a vreg boundary, unmasked vst).
    n2_pad = _round_up(max(n2, 1), 128)
    tile_i = _choose_tile_rows(n1, d, n2_pad, budget, cap_rows=max_tile_rows)
    n1_pad = _round_up(n1, tile_i)

    x1p = X1 if n1_pad == n1 else jnp.pad(X1, ((0, n1_pad - n1), (0, 0)))
    x2t = X2.T                                 # (d, n2): n2 on lanes inside the kernel
    if n2_pad != n2:
        x2t = jnp.pad(x2t, ((0, 0), (0, n2_pad - n2)))

    grid = (n1_pad // tile_i,)

    cost = pl.CostEstimate(
        flops=int((6 * d + 2) * n1_pad * n2_pad),
        transcendentals=int(n1_pad * n2_pad),
        bytes_accessed=int(4 * (n1_pad * d * n2_pad + n1_pad * d + d * n2_pad)),
    )

    out_flat = pl.pallas_call(
        deriv1rbf_kernel,
        out_shape=jax.ShapeDtypeStruct((n1_pad, d * n2_pad), jnp.float32),
        grid_spec=pl.GridSpec(
            grid=grid,
            in_specs=[
                pl.BlockSpec(memory_space=pltpu.MemorySpace.SMEM),        # 1/l^2
                pl.BlockSpec(memory_space=pltpu.MemorySpace.SMEM),        # -c^2
                pl.BlockSpec((tile_i, d), lambda i: (i, 0)),              # X1 tile
                pl.BlockSpec((d, n2_pad), lambda i: (0, 0)),              # X2^T (resident)
            ],
            out_specs=pl.BlockSpec((tile_i, d * n2_pad), lambda i: (i, 0)),
        ),
        compiler_params=pltpu.CompilerParams(
            dimension_semantics=("parallel",),
            vmem_limit_bytes=int(vmem_limit),
        ),
        cost_estimate=cost,
    )(inv_l2, neg_c2, x1p, x2t)

    # (n1_pad, d*n2_pad) is layout-identical to (n1_pad, d, n2_pad); reshape is free,
    # then drop the row / lane padding.
    return out_flat.reshape(n1_pad, d, n2_pad)[:n1, :, :n2]


def deriv1rbf_reference(X1, X2, overall_scaling, character_length):
    """Plain-JAX reference mirroring the PyTorch forward."""
    c = jnp.reshape(overall_scaling, ()).astype(jnp.float32)
    l = character_length.astype(jnp.float32)
    if X2 is None:
        X2 = X1
    D = X1[:, None, :] - X2[None, :, :]            # (n1, n2, d)
    r2 = jnp.sum((D / l) ** 2, axis=-1)            # (n1, n2)
    fr = (c * c) * jnp.exp(-0.5 * r2)
    dl = D / (l * l)                               # (n1, n2, d)
    return -jnp.einsum('ij,ija->iaj', fr, dl)      # (n1, d, n2)


if __name__ == "__main__":
    key = jax.random.PRNGKey(0)
    k1, k2 = jax.random.split(key)

    n1, n2, d = 16, 8, 4
    X1 = jax.random.normal(k1, (n1, d), dtype=jnp.float32)
    X2 = jax.random.normal(k2, (n2, d), dtype=jnp.float32)

    # Deterministic parameters (module stores log-params; c = exp(_c), l = exp(_l)).
    overall_scaling = jnp.array([1.3], dtype=jnp.float32)
    character_length = jnp.array([0.5, 1.0, 1.5, 2.0], dtype=jnp.float32)

    out = deriv1rbf(X1, X2, overall_scaling, character_length)
    out = jax.block_until_ready(out)

    ref = deriv1rbf_reference(X1, X2, overall_scaling, character_length)
    assert out.shape == (n1, d, n2)
    err = float(jnp.max(jnp.abs(out - ref)))
    assert jnp.allclose(out, ref, atol=1e-5, rtol=1e-5), err

    # Also exercise the X2=None (symmetric) path.
    out_sym = jax.block_until_ready(deriv1rbf(X1, None, overall_scaling, character_length))
    ref_sym = deriv1rbf_reference(X1, None, overall_scaling, character_length)
    assert jnp.allclose(out_sym, ref_sym, atol=1e-5, rtol=1e-5)

    print("KERNEL_OK")
</pallas_src>

<mosaic_0001>
module attributes {stable_mosaic.version = 11 : i64} {
  func.func @deriv1rbf_kernel(%arg0: i32, %arg1: memref<1x4xf32, #tpu.memory_space<smem>>, %arg2: memref<1x1xf32, #tpu.memory_space<smem>>, %arg3: memref<8x4xf32, #tpu.memory_space<vmem>>, %arg4: memref<4x128xf32, #tpu.memory_space<vmem>>, %arg5: memref<8x512xf32, #tpu.memory_space<vmem>>) attributes {dimension_semantics = [#tpu.dimension_semantics<parallel>], iteration_bounds = array<i64: 2>, scalar_prefetch = 0 : i64, scratch_operands = 0 : i64, tpu.core_type = #tpu.core_type<tc>, window_params = [{transform_indices = @transform_0, window_bounds = array<i64: 1, 4>}, {transform_indices = @transform_1, window_bounds = array<i64: 1, 1>}, {transform_indices = @transform_2, window_bounds = array<i64: 8, 4>}, {pipeline_mode = #tpu.pipeline_mode<synchronous>, transform_indices = @transform_3, window_bounds = array<i64: 4, 128>}, {transform_indices = @transform_4, window_bounds = array<i64: 8, 512>}]} {
    %c0 = arith.constant 0 : index
    %c0_0 = arith.constant 0 : index
    %0 = memref.load %arg2[%c0, %c0_0] : memref<1x1xf32, #tpu.memory_space<smem>>
    %cst = arith.constant 0.000000e+00 : f32
    %1 = vector.broadcast %cst : f32 to vector<8x128xf32>
    %c0_1 = arith.constant 0 : index
    %c0_2 = arith.constant 0 : index
    %2 = vector.load %arg3[%c0_1, %c0_2] : memref<8x4xf32, #tpu.memory_space<vmem>>, vector<8x1xf32>
    %c0_3 = arith.constant 0 : index
    %c0_4 = arith.constant 0 : index
    %3 = vector.load %arg4[%c0_3, %c0_4] : memref<4x128xf32, #tpu.memory_space<vmem>>, vector<1x128xf32>
    %4 = vector.broadcast %2 : vector<8x1xf32> to vector<8x128xf32>
    %5 = vector.broadcast %3 : vector<1x128xf32> to vector<8x128xf32>
    %6 = arith.subf %4, %5 : vector<8x128xf32>
    %c0_5 = arith.constant 0 : index
    %c0_6 = arith.constant 0 : index
    %7 = memref.load %arg1[%c0_5, %c0_6] : memref<1x4xf32, #tpu.memory_space<smem>>
    %8 = vector.broadcast %7 : f32 to vector<8x128xf32>
    %9 = arith.mulf %6, %8 : vector<8x128xf32>
    %c0_7 = arith.constant 0 : index
    %c0_8 = arith.constant 0 : index
    %10 = vector.load %arg5[%c0_7, %c0_8] : memref<8x512xf32, #tpu.memory_space<vmem>>, vector<8x128xf32>
    tpu.vector_store %arg5[%c0_7, %c0_8], %9 {strides = array<i32>} : memref<8x512xf32, #tpu.memory_space<vmem>>, vector<8x128xf32>,
    %11 = arith.mulf %9, %6 : vector<8x128xf32>
    %12 = arith.addf %1, %11 : vector<8x128xf32>
    %c0_9 = arith.constant 0 : index
    %c1 = arith.constant 1 : index
    %13 = vector.load %arg3[%c0_9, %c1] : memref<8x4xf32, #tpu.memory_space<vmem>>, vector<8x1xf32>
    %c1_10 = arith.constant 1 : index
    %c0_11 = arith.constant 0 : index
    %14 = vector.load %arg4[%c1_10, %c0_11] : memref<4x128xf32, #tpu.memory_space<vmem>>, vector<1x128xf32>
    %15 = vector.broadcast %13 : vector<8x1xf32> to vector<8x128xf32>
    %16 = vector.broadcast %14 : vector<1x128xf32> to vector<8x128xf32>
    %17 = arith.subf %15, %16 : vector<8x128xf32>
    %c0_12 = arith.constant 0 : index
    %c1_13 = arith.constant 1 : index
    %18 = memref.load %arg1[%c0_12, %c1_13] : memref<1x4xf32, #tpu.memory_space<smem>>
    %19 = vector.broadcast %18 : f32 to vector<8x128xf32>
    %20 = arith.mulf %17, %19 : vector<8x128xf32>
    %c0_14 = arith.constant 0 : index
    %c128 = arith.constant 128 : index
    %21 = vector.load %arg5[%c0_14, %c128] : memref<8x512xf32, #tpu.memory_space<vmem>>, vector<8x128xf32>
    tpu.vector_store %arg5[%c0_14, %c128], %20 {strides = array<i32>} : memref<8x512xf32, #tpu.memory_space<vmem>>, vector<8x128xf32>,
    %22 = arith.mulf %20, %17 : vector<8x128xf32>
    %23 = arith.addf %12, %22 : vector<8x128xf32>
    %c0_15 = arith.constant 0 : index
    %c2 = arith.constant 2 : index
    %24 = vector.load %arg3[%c0_15, %c2] : memref<8x4xf32, #tpu.memory_space<vmem>>, vector<8x1xf32>
    %c2_16 = arith.constant 2 : index
    %c0_17 = arith.constant 0 : index
    %25 = vector.load %arg4[%c2_16, %c0_17] : memref<4x128xf32, #tpu.memory_space<vmem>>, vector<1x128xf32>
    %26 = vector.broadcast %24 : vector<8x1xf32> to vector<8x128xf32>
    %27 = vector.broadcast %25 : vector<1x128xf32> to vector<8x128xf32>
    %28 = arith.subf %26, %27 : vector<8x128xf32>
    %c0_18 = arith.constant 0 : index
    %c2_19 = arith.constant 2 : index
    %29 = memref.load %arg1[%c0_18, %c2_19] : memref<1x4xf32, #tpu.memory_space<smem>>
    %30 = vector.broadcast %29 : f32 to vector<8x128xf32>
    %31 = arith.mulf %28, %30 : vector<8x128xf32>
    %c0_20 = arith.constant 0 : index
    %c256 = arith.constant 256 : index
    %32 = vector.load %arg5[%c0_20, %c256] : memref<8x512xf32, #tpu.memory_space<vmem>>, vector<8x128xf32>
    tpu.vector_store %arg5[%c0_20, %c256], %31 {strides = array<i32>} : memref<8x512xf32, #tpu.memory_space<vmem>>, vector<8x128xf32>,
    %33 = arith.mulf %31, %28 : vector<8x128xf32>
    %34 = arith.addf %23, %33 : vector<8x128xf32>
    %c0_21 = arith.constant 0 : index
    %c3 = arith.constant 3 : index
    %35 = vector.load %arg3[%c0_21, %c3] : memref<8x4xf32, #tpu.memory_space<vmem>>, vector<8x1xf32>
    %c3_22 = arith.constant 3 : index
    %c0_23 = arith.constant 0 : index
    %36 = vector.load %arg4[%c3_22, %c0_23] : memref<4x128xf32, #tpu.memory_space<vmem>>, vector<1x128xf32>
    %37 = vector.broadcast %35 : vector<8x1xf32> to vector<8x128xf32>
    %38 = vector.broadcast %36 : vector<1x128xf32> to vector<8x128xf32>
    %39 = arith.subf %37, %38 : vector<8x128xf32>
    %c0_24 = arith.constant 0 : index
    %c3_25 = arith.constant 3 : index
    %40 = memref.load %arg1[%c0_24, %c3_25] : memref<1x4xf32, #tpu.memory_space<smem>>
    %41 = vector.broadcast %40 : f32 to vector<8x128xf32>
    %42 = arith.mulf %39, %41 : vector<8x128xf32>
    %c0_26 = arith.constant 0 : index
    %c384 = arith.constant 384 : index
    %43 = vector.load %arg5[%c0_26, %c384] : memref<8x512xf32, #tpu.memory_space<vmem>>, vector<8x128xf32>
    tpu.vector_store %arg5[%c0_26, %c384], %42 {strides = array<i32>} : memref<8x512xf32, #tpu.memory_space<vmem>>, vector<8x128xf32>,
    %44 = arith.mulf %42, %39 : vector<8x128xf32>
    %45 = arith.addf %34, %44 : vector<8x128xf32>
    %cst_27 = arith.constant -5.000000e-01 : f32
    %46 = vector.broadcast %cst_27 : f32 to vector<8x128xf32>
    %47 = arith.mulf %46, %45 : vector<8x128xf32>
    %48 = math.exp %47 : vector<8x128xf32>
    %49 = vector.broadcast %0 : f32 to vector<8x128xf32>
    %50 = arith.mulf %49, %48 : vector<8x128xf32>
    %c0_28 = arith.constant 0 : index
    %c0_29 = arith.constant 0 : index
    %51 = vector.load %arg5[%c0_28, %c0_29] : memref<8x512xf32, #tpu.memory_space<vmem>>, vector<8x128xf32>
    %52 = arith.mulf %51, %50 : vector<8x128xf32>
    %c0_30 = arith.constant 0 : index
    %c0_31 = arith.constant 0 : index
    %53 = vector.load %arg5[%c0_30, %c0_31] : memref<8x512xf32, #tpu.memory_space<vmem>>, vector<8x128xf32>
    tpu.vector_store %arg5[%c0_30, %c0_31], %52 {strides = array<i32>} : memref<8x512xf32, #tpu.memory_space<vmem>>, vector<8x128xf32>,
    %c0_32 = arith.constant 0 : index
    %c128_33 = arith.constant 128 : index
    %54 = vector.load %arg5[%c0_32, %c128_33] : memref<8x512xf32, #tpu.memory_space<vmem>>, vector<8x128xf32>
    %55 = arith.mulf %54, %50 : vector<8x128xf32>
    %c0_34 = arith.constant 0 : index
    %c128_35 = arith.constant 128 : index
    %56 = vector.load %arg5[%c0_34, %c128_35] : memref<8x512xf32, #tpu.memory_space<vmem>>, vector<8x128xf32>
    tpu.vector_store %arg5[%c0_34, %c128_35], %55 {strides = array<i32>} : memref<8x512xf32, #tpu.memory_space<vmem>>, vector<8x128xf32>,
    %c0_36 = arith.constant 0 : index
    %c256_37 = arith.constant 256 : index
    %57 = vector.load %arg5[%c0_36, %c256_37] : memref<8x512xf32, #tpu.memory_space<vmem>>, vector<8x128xf32>
    %58 = arith.mulf %57, %50 : vector<8x128xf32>
    %c0_38 = arith.constant 0 : index
    %c256_39 = arith.constant 256 : index
    %59 = vector.load %arg5[%c0_38, %c256_39] : memref<8x512xf32, #tpu.memory_space<vmem>>, vector<8x128xf32>
    tpu.vector_store %arg5[%c0_38, %c256_39], %58 {strides = array<i32>} : memref<8x512xf32, #tpu.memory_space<vmem>>, vector<8x128xf32>,
    %c0_40 = arith.constant 0 : index
    %c384_41 = arith.constant 384 : index
    %60 = vector.load %arg5[%c0_40, %c384_41] : memref<8x512xf32, #tpu.memory_space<vmem>>, vector<8x128xf32>
    %61 = arith.mulf %60, %50 : vector<8x128xf32>
    %c0_42 = arith.constant 0 : index
    %c384_43 = arith.constant 384 : index
    %62 = vector.load %arg5[%c0_42, %c384_43] : memref<8x512xf32, #tpu.memory_space<vmem>>, vector<8x128xf32>
    tpu.vector_store %arg5[%c0_42, %c384_43], %61 {strides = array<i32>} : memref<8x512xf32, #tpu.memory_space<vmem>>, vector<8x128xf32>,
    return
  }
  func.func @transform_0(%arg0: i32) -> (i32, i32) {
    %c0_i32 = arith.constant 0 : i32
    %c0_i32_0 = arith.constant 0 : i32
    %c0_i32_1 = arith.constant 0 : i32
    return %c0_i32, %c0_i32_0 : i32, i32
  }
  func.func @transform_1(%arg0: i32) -> (i32, i32) {
    %c0_i32 = arith.constant 0 : i32
    %c0_i32_0 = arith.constant 0 : i32
    %c0_i32_1 = arith.constant 0 : i32
    return %c0_i32, %c0_i32_0 : i32, i32
  }
  func.func @transform_2(%arg0: i32) -> (i32, i32) {
    %c0_i32 = arith.constant 0 : i32
    %c0_i32_0 = arith.constant 0 : i32
    return %arg0, %c0_i32 : i32, i32
  }
  func.func @transform_3(%arg0: i32) -> (i32, i32) {
    %c0_i32 = arith.constant 0 : i32
    %c0_i32_0 = arith.constant 0 : i32
    %c0_i32_1 = arith.constant 0 : i32
    return %c0_i32, %c0_i32_0 : i32, i32
  }
  func.func @transform_4(%arg0: i32) -> (i32, i32) {
    %c0_i32 = arith.constant 0 : i32
    %c0_i32_0 = arith.constant 0 : i32
    return %arg0, %c0_i32 : i32, i32
  }
}

</mosaic_0001>

<bundles_post_ra>
// kernel: tpu_custom_call.1
= control target key start
LH: loop header
LB: loop body
LE: loop exit
PB: predicated region body
PF: predicated region fallthrough
CT: control target
= control target key end

     0   :  { %s673_s0 = inlined_call_operand.vmem [shape: f32[1,4], index: 0, kind: input, shape index: {}]   ;;  %s674_s1 = inlined_call_operand.<no memory space> [shape: f32[1,1], index: 1, kind: input, shape index: {}]   ;;  %s675_s2 = inlined_call_operand.vmem [shape: f32[16,4], index: 2, kind: input, shape index: {}]   ;;  %s676_s3 = inlined_call_operand.vmem [shape: f32[4,128], index: 3, kind: input, shape index: {}]   ;;  %s677_s4 = inlined_call_operand.hbm [shape: f32[16,512], index: 4, kind: output, shape index: {}]  }
   0x1   :  { %9 = sst [smem:[#allocation2]] %s674_s1 }
   0x2   :  { %10 = vsyncpa [#allocation5], 0 }
   0x3   :  { %11 = vsyncpa [#allocation4], 0 }
   0x4   :  { %13 = vsyncpa [#allocation4 + $0x1], 0  ;;  %s572_s17 = smov 0   ;;  %s574_s18 = smov 0  }
   0x5   :  { %s576_s19 = smov 0   ;;  %s578_s20 = smov 0  }
   0x6 LB: > { %s593_s1 = sadd.s32 4294967295, %s537_s20   ;;  %s374_s21 = sadd.s32 4294967294, %s537_s20   ;;  %s537_s20 = sphi %s578_s20, %s683_s20   ;;  %s533_s19 = sphi %s576_s19, %s682_s19   ;;  %s529_s18 = sphi %s574_s18, %s681_s18   ;;  %s525_s17 = sphi %s572_s17, %s680_s17  }
   0x7   : > { %s597_s22 = sadd.s32 1, %s537_s20   ;;  %s115_s23 = sadd.s32 1, %s533_s19 }
   0x8   : > { %s112_s24 = ssub.s32 %s537_s20, %s597_s22  ;;  %p125_p0 = scmp.ne.s32.totalorder %s533_s19, %s529_s18 }
   0x9   : > { %p113_p1 = scmp.eq.s32.totalorder %s112_s24, 0  ;;  %p126_p2 = scmp.eq.s32.totalorder %s593_s1, 1 }
   0xa   : > { %p131_p3 = scmp.ne.s32.totalorder %s529_s18, %s525_s17  ;;  %p132_p4 = scmp.eq.s32.totalorder %s374_s21, 1 }
   0xb   : > { %s608_s25 = scalar_select %p113_p1, %s533_s19, %s115_s23  }
   0xc   : > { %p610_p5 = por %p126_p2, %p125_p0  ;;  %p614_p6 = por %p132_p4, %p131_p3 }
   0xd   : > { %p375_p7 = scmp.ge.s32.totalorder %s537_s20, 1  ;;  %p139_p8 = scmp.lt.s32.totalorder %s537_s20, 3 }
   0xe   : > { %p405_p9 = scmp.eq.s32.totalorder %s593_s1, 0  ;;  %s151_s30 = sshll.u32 %s673_s0, 4  ;;  %s152_s30 = int_to_ptr.vmem [resolvable:$true] %s151_s30 }
   0xf   : > { %p140_p10 = pnand %p375_p7, %p139_p8  ;;  %s539_s5 = smov [#allocation3]  }
  0x11   : > { %p397_p11 = pneg %p140_p10  ;;  %177 = sbr.rel (%p140_p10) target bundleno = 189 (0xbd), region = 36 }
  0x13   : > { %p398_p12 = pnand %p405_p9, %p397_p11 }
  0x15   : > { %400 = dma.vmem_to_smem (!%p398_p12), %s152_s30, 16, %s539_s5, [#allocation5]  }
  0x16   : > { %516 = dma.done.wait (%p405_p9), [#allocation5], 16  }
  0x17   : > { %518 = vsyncadd (%p405_p9), [#allocation5], 4294967280 }
  0x18   : > { %184 = sfence }
  0x19   : > { %p204_p13 = scmp.lt.s32.totalorder %s593_s1, 1  ;;  %v540_v0 = vmov 0   ;;  %v541_v1 = vmov 2   ;;  %v542_v3 = vmov 1   ;;  %v543_v4 = vmov 3   ;;  %s218_s11 = sld [smem:[#allocation3]] }
  0x1a   : > { %445 = vset.pattern.permute.xlu0 %v540_v0  ;;  %447 = vset.pattern.permute.xlu1 %v541_v1  ;;  %s383_s12 = sld [smem:[#allocation3 + $0x2]]  ;;  %v450_v7 = vld [vmem:[%s676_s3] ss:$0 sm:$0xff]  ;;  %v451_v8 = vld [vmem:[%s676_s3 + $0x2] ss:$0 sm:$0xff]  ;;  %s390_s8 = sshll.u32 %s593_s1, 5 }
  0x1b   : > { %s205_s6 = scalar_select %p204_p13, %s593_s1, 1  ;;  %v452_v10 = vld [vmem:[%s676_s3 + $0x1] ss:$0 sm:$0xff]  ;;  %v453_v11 = vld [vmem:[%s676_s3 + $0x3] ss:$0 sm:$0xff] }
  0x1c   : > { %s382_s13 = sld [smem:[#allocation3 + $0x1]]  ;;  %s491_s24 = scalar_lea.hbm %s677_s4, 64 }
  0x1d   : > { %s381_s7 = sshll.u32 %s205_s6, 3  ;;  %s384_s16 = sld [smem:[#allocation3 + $0x3]] }
  0x1e   : > { %s207_s10 = scalar_lea.vmem %s675_s2, %s381_s7  ;;  %s208_s5 = sld [smem:[#allocation2]] }
  0x1f   : > { %v209_v2 = vld [vmem:[%s207_s10] sm:$0xff]  ;;  %v219_v12 = vstv %s218_s11  ;;  %s201_s6 = sand.u32 1, %s529_s18   ;;  %s298_s11 = scalar_lea.hbm %s677_s4, %s390_s8 }
  0x20   : > { %213 = vperm.xlu0 %445, %v209_v2   ;;  %243 = vperm.xlu1 %447, %v209_v2   ;;  %v249_v14 = vstv %s383_s12  ;;  %s380_s7 = sshll.u32 %s201_s6, 5  ;;  %s302_s14 = sshll.u32 %s298_s11, 4  ;;  %s303_s14 = int_to_ptr.hbm [resolvable:$true] %s302_s14 }
  0x21   : > { %s203_s12 = scalar_lea.vmem [#allocation6], %s380_s7  ;;  %s287_s1 = scalar_lea.sflag [#allocation4], %s201_s6 }
  0x22   : > { %v234_v15 = vstv %s382_s13  ;;  %s300_s13 = sshll.u32 %s203_s12, 4  ;;  %s485_s15 = sshra.s32 %s303_s14, 4  ;;  %s301_s13 = int_to_ptr.vmem [resolvable:$true] %s300_s13  ;;  %s486_s15 = int_to_ptr.hbm [resolvable:$true] %s485_s15 }
  0x23   : > { %v264_v21 = vstv %s384_s16  ;;  %s487_s16 = scalar_lea.hbm %s486_s15, 32  ;;  %p492_p3 = scmp.lt.s32.totalorder %s486_s15, %s677_s4 }
  0x24   : > { %v272_v34 = vstv %s208_s5  ;;  %p488_p0 = scmp.ne.s32.totalorder %s486_s15, %s487_s16  ;;  %p493_p4 = scmp.lt.s32.totalorder %s491_s24, %s487_s16 }
  0x26   : > { %p489_p1 = pnand %p488_p0, %p610_p5  ;;  %p494_p7 = por %p493_p4, %p492_p3 }
  0x28   : > { %446 = vset.pattern.permute.xlu0 %v542_v3  ;;  %448 = vset.pattern.permute.xlu1 %v543_v4  ;;  %p490_p2 = pneg %p489_p1 }
  0x29   : > { %228 = vperm.xlu0 %446, %v209_v2   ;;  %258 = vperm.xlu1 %448, %v209_v2  }
  0x2a   : > { %p495_p8 = pnand %p494_p7, %p490_p2 }
  0x31   : > { %449 = vset.pattern.permute.xlu0 %v543_v4 }
  0x92   : > { %v214_v5 = vpop.permute.xlu0 %213  ;;  %v244_v6 = vpop.permute.xlu1 %243 }
  0x93   : > { %v217_v9 = vsub.f32 %v214_v5, %v450_v7  ;;  %v247_v13 = vsub.f32 %v244_v6, %v451_v8 }
  0x95   : > { %v220_v18 = vmul.f32 %v219_v12, %v217_v9  ;;  %v250_v22 = vmul.f32 %v249_v14, %v247_v13 }
  0x97   : > { %v222_v24 = vmul.f32 %v220_v18, %v217_v9  ;;  %v252_v27 = vmul.f32 %v250_v22, %v247_v13 }
  0x9b   : > { %v229_v16 = vpop.permute.xlu0 %228  ;;  %v259_v17 = vpop.permute.xlu1 %258 }
  0x9c   : > { %v232_v19 = vsub.f32 %v229_v16, %v452_v10  ;;  %v262_v20 = vsub.f32 %v259_v17, %v453_v11 }
  0x9e   : > { %v235_v23 = vmul.f32 %v234_v15, %v232_v19  ;;  %v265_v26 = vmul.f32 %v264_v21, %v262_v20 }
  0xa0   : > { %v237_v25 = vmul.f32 %v235_v23, %v232_v19  ;;  %v267_v30 = vmul.f32 %v265_v26, %v262_v20 }
  0xa2   : > { %v238_v28 = vadd.f32 %v237_v25, %v222_v24 }
  0xa4   : > { %v253_v29 = vadd.f32 %v252_v27, %v238_v28 }
  0xa6   : > { %v268_v31 = vadd.f32 %v267_v30, %v253_v29 }
  0xa8   : > { %v269_v32 = vmul.f32 -0.5, %v268_v31 }
  0xaa   : > { %v270_v33 = vmul.f32 1.442695, %v269_v32 }
  0xac   : > { %454 = vpow2.f32 %v270_v33 }
  0xb2   : > { %v455_v35 = vpop.eup %454 }
  0xb3   : > { %v273_v36 = vmul.f32 %v455_v35, %v272_v34 }
  0xb5   : > { %v284_v37 = vmul.f32 %v273_v36, %v265_v26  ;;  %v275_v38 = vmul.f32 %v273_v36, %v220_v18  ;;  %v278_v39 = vmul.f32 %v273_v36, %v235_v23  ;;  %v281_v40 = vmul.f32 %v273_v36, %v250_v22 }
  0xb7   : > { %285 = vst [vmem:[%s203_s12 + $0x18] sm:$0xff] %v284_v37 }
  0xb8   : > { %276 = vst [vmem:[%s203_s12] sm:$0xff] %v275_v38 }
  0xb9   : > { %279 = vst [vmem:[%s203_s12 + $0x8] sm:$0xff] %v278_v39 }
  0xba   : > { %282 = vst [vmem:[%s203_s12 + $0x10] sm:$0xff] %v281_v40 }
  0xbb   : > { %498 = shalt.err (!%p495_p8)
}
  0xbc   : > { %395 = dma.vmem_to_hbm [thread:$0]  (%p610_p5), %s301_s13, 512, %s303_s14, %s287_s1  }
  0xbd PF: > { %p407_p9 = scmp.ge.s32.totalorder %s537_s20, 2  ;;  %s314_s30 = sand.u32 1, %s525_s17  }
  0xbe   : > { %s315_s5 = scalar_lea.sflag [#allocation4], %s314_s30 }
  0xbf   : > { %p402_p10 = pnand %p407_p9, %p614_p6 }
  0xc1   : > { %p403_p11 = pneg %p402_p10 }
  0xc3   : > { %520 = dma.done.wait (%p403_p11), %s315_s5, 512  }
  0xc4   : > { %522 = vsyncadd (%p403_p11), %s315_s5, 4294966784  ;;  %p16_p12 = scmp.ge.s32.totalorder %s597_s22, 4   ;;  %s680_s17 = smov %s529_s18 }
  0xc5   : > { %s681_s18 = smov %s533_s19  ;;  %s682_s19 = smov %s608_s25 }
  0xc6   : > { %s683_s20 = smov %s597_s22  ;;  %18 = sbr.rel (!%p16_p12) target bundleno = 6 (0x6), region = 76 }
  0xcb   :  { %321 = vsyncpa [#allocation4], 1 }
  0xcc   :  { %323 = vsyncpa [#allocation4 + $0x1], 1 }
  0xcd   :  { %324 = vsyncpa [#allocation5], 1 }
  0xce   :  { %326 = vsyncpa [#allocation5 + $0x1], 1 }

</bundles_post_ra>
